<compile_context>
chip_gen: v7x
topology: tpu7x:2x2x1
jax: 0.10.0
libtpu: 0.0.40
codegen_flags: <defaults>
</compile_context>

<pallas_src>
import math

import jax
import jax.numpy as jnp
from jax import lax
from jax.experimental import pallas as pl
from jax.experimental.pallas import tpu as pltpu

CACHE_NUM = 64  # hardcoded in the PyTorch forward()


def _output_segments(head_dim, embed_dim, t_total, cache_num, s_new):
    """Static map of the returned (s_new, E) tile back onto (head, dim, time).

    forward(): y (H, T, Dh) -> transpose(1, 2) -> (H, Dh, T) -> view(-1, E) -> [cache_num:]
    hence      out[r, c] = y[h, t, d]  with  h*Dh*T + d*T + t == (cache_num + r)*E + c.
    Each output row splits into a few contiguous-in-t segments; they are computed here
    at trace time (shapes are static) so the kernel emits only static slice copies.
    """
    segs = []
    for r in range(s_new):
        f = (cache_num + r) * embed_dim
        c = 0
        while c < embed_dim:
            h = f // (head_dim * t_total)
            rem = f - h * head_dim * t_total
            d = rem // t_total
            t0 = rem - d * t_total
            ln = min(t_total - t0, embed_dim - c)
            segs.append((r, c, h, d, t0, ln))
            f += ln
            c += ln
    return segs


def _build_kernel(n_heads, head_dim, embed_dim, cache_num, s_new):
    del n_heads  # head count only matters through the static segment table
    t_total = cache_num + s_new
    scale = 1.0 / math.sqrt(head_dim)

    segs = _output_segments(head_dim, embed_dim, t_total, cache_num, s_new)
    live_heads = sorted({h for (_, _, h, _, _, _) in segs})  # heads that reach the output
    slot = {h: i for i, h in enumerate(live_heads)}
    n_live = len(live_heads)

    def kernel(q_c_ref, q_ref, k_c_ref, k_ref, v_c_ref, v_ref, o_ref,
               q_sc, k_sc, v_sc, y_sc):
        # ---- fused torch.concat([x_c, x]) for the live heads only -----------------
        for h in live_heads:
            src = slice(h * head_dim, (h + 1) * head_dim)            # lanes in inputs
            dst = slice(slot[h] * head_dim, (slot[h] + 1) * head_dim)
            # fold 1/sqrt(Dh) into q once instead of scaling every (T, T) score tile
            q_sc[:cache_num, dst] = q_c_ref[:, src] * scale
            q_sc[cache_num:, dst] = q_ref[:, src] * scale
            k_sc[:cache_num, dst] = k_c_ref[:, src]
            k_sc[cache_num:, dst] = k_ref[:, src]
            v_sc[:cache_num, dst] = v_c_ref[:, src]
            v_sc[cache_num:, dst] = v_ref[:, src]

        # ---- attention for the live heads (static, unrolled) -----------------------
        for h in live_heads:
            dst = slice(slot[h] * head_dim, (slot[h] + 1) * head_dim)
            q_h = q_sc[:, dst]                                    # (T, Dh), pre-scaled
            k_h = k_sc[:, dst]                                    # (T, Dh)
            v_h = v_sc[:, dst]                                    # (T, Dh)

            # Transposed scores: s_t[s, t] = k[s]·q[t] (keys on sublanes, queries on
            # lanes), so the PV product below lands directly in (Dh, T) orientation.
            s_t = lax.dot_general(k_h, q_h, (((1,), (1,)), ((), ())),
                                  preferred_element_type=jnp.float32)   # (T, T)

            # Softmax over keys (axis 0). NOTE: forward() never applies the causal
            # `bias` buffer or attn_dropout, so neither is applied here.
            m = jnp.max(s_t, axis=0, keepdims=True)                     # (1, T)
            p_t = jnp.exp(s_t - m)                                      # (T, T)
            denom = jnp.sum(p_t, axis=0, keepdims=True)                 # (1, T)

            # y^T[d, t] = sum_s v[s, d] * p_t[s, t]  (dv-style TN contraction).
            y_t = lax.dot_general(v_h, p_t, (((0,), (0,)), ((), ())),
                                  preferred_element_type=jnp.float32)   # (Dh, T)
            # Normalize AFTER PV: scale (Dh, T) instead of the (T, T) prob matrix.
            # Exact reciprocal (only T values); approx=True's ~2^-12 relative error
            # would fall outside the 1e-5 verification tolerance.
            y_sc[dst, :] = y_t * pl.reciprocal(denom, approx=False)     # rows = same range

        # ---- emit the final scrambled (s_new, E) tile in-kernel ---------------------
        # (== y.transpose(1, 2).contiguous().view(-1, E)[cache_num:], no wrapper ops)
        for (r, c, h, d, t0, ln) in segs:
            row = slot[h] * head_dim + d
            o_ref[r:r + 1, c:c + ln] = y_sc[row:row + 1, t0:t0 + ln]

    scratch_shapes = [
        pltpu.VMEM((t_total, n_live * head_dim), jnp.float32),   # q (pre-scaled), concat'd
        pltpu.VMEM((t_total, n_live * head_dim), jnp.float32),   # k, concat'd
        pltpu.VMEM((t_total, n_live * head_dim), jnp.float32),   # v, concat'd
        pltpu.VMEM((n_live * head_dim, t_total), jnp.float32),   # y^T staging
    ]
    return kernel, scratch_shapes


def selective_attention(q, k, v, q_c, k_c, v_c, *, n_heads, embed_dim):
    """Pallas implementation of SelectiveAttention.forward -> (s_new, embed_dim)."""
    assert embed_dim % n_heads == 0
    assert q_c.shape[0] == CACHE_NUM and k_c.shape[0] == CACHE_NUM and v_c.shape[0] == CACHE_NUM
    head_dim = embed_dim // n_heads
    s_new = q.shape[0]

    kernel, scratch_shapes = _build_kernel(n_heads, head_dim, embed_dim, CACHE_NUM, s_new)

    # Single invocation, no grid: everything is VMEM resident, nothing to pipeline,
    # nothing worth splitting across TensorCores at this size.
    return pl.pallas_call(
        kernel,
        out_shape=jax.ShapeDtypeStruct((s_new, embed_dim), jnp.float32),
        in_specs=[pl.BlockSpec(memory_space=pltpu.MemorySpace.VMEM)] * 6,
        out_specs=pl.BlockSpec(memory_space=pltpu.MemorySpace.VMEM),
        scratch_shapes=scratch_shapes,
    )(q_c, q, k_c, k, v_c, v)


def _reference(q, k, v, q_c, k_c, v_c, *, n_heads, embed_dim):
    """Pure-jnp replica of the PyTorch forward, for verification only."""
    head_dim = embed_dim // n_heads
    k_full = jnp.concatenate([k_c, k], axis=0)
    q_full = jnp.concatenate([q_c, q], axis=0)
    v_full = jnp.concatenate([v_c, v], axis=0)
    t_total = q_full.shape[0]
    qh = q_full.reshape(t_total, n_heads, head_dim).transpose(1, 0, 2)
    kh = k_full.reshape(t_total, n_heads, head_dim).transpose(1, 0, 2)
    vh = v_full.reshape(t_total, n_heads, head_dim).transpose(1, 0, 2)
    att = jnp.einsum("htd,hsd->hts", qh, kh) * (1.0 / math.sqrt(head_dim))
    att = jax.nn.softmax(att, axis=-1)
    y = jnp.einsum("hts,hsd->htd", att, vh)
    y = jnp.transpose(y, (0, 2, 1)).reshape(-1, embed_dim)
    return y[CACHE_NUM:, :]


if __name__ == "__main__":
    n_heads = 4
    embed_dim = 32
    s_new = 8  # new (uncached) tokens

    key = jax.random.PRNGKey(0)
    k0, k1, k2, k3, k4, k5 = jax.random.split(key, 6)
    q = jax.random.normal(k0, (s_new, embed_dim), jnp.float32)
    k = jax.random.normal(k1, (s_new, embed_dim), jnp.float32)
    v = jax.random.normal(k2, (s_new, embed_dim), jnp.float32)
    q_c = jax.random.normal(k3, (CACHE_NUM, embed_dim), jnp.float32)
    k_c = jax.random.normal(k4, (CACHE_NUM, embed_dim), jnp.float32)
    v_c = jax.random.normal(k5, (CACHE_NUM, embed_dim), jnp.float32)

    out = selective_attention(q, k, v, q_c, k_c, v_c,
                              n_heads=n_heads, embed_dim=embed_dim)
    out = jax.block_until_ready(out)

    ref = _reference(q, k, v, q_c, k_c, v_c,
                     n_heads=n_heads, embed_dim=embed_dim)
    assert out.shape == ref.shape == (s_new, embed_dim)
    assert jnp.allclose(out, ref, atol=1e-5, rtol=1e-5), "mismatch vs reference"

    print("KERNEL_OK")
</pallas_src>

<mosaic_0001>
module attributes {stable_mosaic.version = 11 : i64} {
  func.func @kernel(%arg0: memref<64x32xf32, #tpu.memory_space<vmem>>, %arg1: memref<8x32xf32, #tpu.memory_space<vmem>>, %arg2: memref<64x32xf32, #tpu.memory_space<vmem>>, %arg3: memref<8x32xf32, #tpu.memory_space<vmem>>, %arg4: memref<64x32xf32, #tpu.memory_space<vmem>>, %arg5: memref<8x32xf32, #tpu.memory_space<vmem>>, %arg6: memref<8x32xf32, #tpu.memory_space<vmem>>, %arg7: memref<72x8xf32, #tpu.memory_space<vmem>>, %arg8: memref<72x8xf32, #tpu.memory_space<vmem>>, %arg9: memref<72x8xf32, #tpu.memory_space<vmem>>, %arg10: memref<8x72xf32, #tpu.memory_space<vmem>>) attributes {dimension_semantics = [], scalar_prefetch = 0 : i64, scratch_operands = 4 : i64, tpu.core_type = #tpu.core_type<tc>} {
    %c0 = arith.constant 0 : index
    %c24 = arith.constant 24 : index
    %0 = vector.load %arg0[%c0, %c24] : memref<64x32xf32, #tpu.memory_space<vmem>>, vector<64x8xf32>
    %cst = arith.constant 0.353553385 : f32
    %1 = vector.broadcast %cst : f32 to vector<64x8xf32>
    %2 = arith.mulf %0, %1 : vector<64x8xf32>
    %c0_0 = arith.constant 0 : index
    %c0_1 = arith.constant 0 : index
    %3 = vector.load %arg7[%c0_0, %c0_1] : memref<72x8xf32, #tpu.memory_space<vmem>>, vector<64x8xf32>
    tpu.vector_store %arg7[%c0_0, %c0_1], %2 {strides = array<i32>} : memref<72x8xf32, #tpu.memory_space<vmem>>, vector<64x8xf32>,
    %c0_2 = arith.constant 0 : index
    %c24_3 = arith.constant 24 : index
    %4 = vector.load %arg1[%c0_2, %c24_3] : memref<8x32xf32, #tpu.memory_space<vmem>>, vector<8x8xf32>
    %cst_4 = arith.constant 0.353553385 : f32
    %5 = vector.broadcast %cst_4 : f32 to vector<8x8xf32>
    %6 = arith.mulf %4, %5 : vector<8x8xf32>
    %c64 = arith.constant 64 : index
    %c0_5 = arith.constant 0 : index
    %7 = vector.load %arg7[%c64, %c0_5] : memref<72x8xf32, #tpu.memory_space<vmem>>, vector<8x8xf32>
    tpu.vector_store %arg7[%c64, %c0_5], %6 {strides = array<i32>} : memref<72x8xf32, #tpu.memory_space<vmem>>, vector<8x8xf32>,
    %c0_6 = arith.constant 0 : index
    %c24_7 = arith.constant 24 : index
    %8 = vector.load %arg2[%c0_6, %c24_7] : memref<64x32xf32, #tpu.memory_space<vmem>>, vector<64x8xf32>
    %c0_8 = arith.constant 0 : index
    %c0_9 = arith.constant 0 : index
    %9 = vector.load %arg8[%c0_8, %c0_9] : memref<72x8xf32, #tpu.memory_space<vmem>>, vector<64x8xf32>
    tpu.vector_store %arg8[%c0_8, %c0_9], %8 {strides = array<i32>} : memref<72x8xf32, #tpu.memory_space<vmem>>, vector<64x8xf32>,
    %c0_10 = arith.constant 0 : index
    %c24_11 = arith.constant 24 : index
    %10 = vector.load %arg3[%c0_10, %c24_11] : memref<8x32xf32, #tpu.memory_space<vmem>>, vector<8x8xf32>
    %c64_12 = arith.constant 64 : index
    %c0_13 = arith.constant 0 : index
    %11 = vector.load %arg8[%c64_12, %c0_13] : memref<72x8xf32, #tpu.memory_space<vmem>>, vector<8x8xf32>
    tpu.vector_store %arg8[%c64_12, %c0_13], %10 {strides = array<i32>} : memref<72x8xf32, #tpu.memory_space<vmem>>, vector<8x8xf32>,
    %c0_14 = arith.constant 0 : index
    %c24_15 = arith.constant 24 : index
    %12 = vector.load %arg4[%c0_14, %c24_15] : memref<64x32xf32, #tpu.memory_space<vmem>>, vector<64x8xf32>
    %c0_16 = arith.constant 0 : index
    %c0_17 = arith.constant 0 : index
    %13 = vector.load %arg9[%c0_16, %c0_17] : memref<72x8xf32, #tpu.memory_space<vmem>>, vector<64x8xf32>
    tpu.vector_store %arg9[%c0_16, %c0_17], %12 {strides = array<i32>} : memref<72x8xf32, #tpu.memory_space<vmem>>, vector<64x8xf32>,
    %c0_18 = arith.constant 0 : index
    %c24_19 = arith.constant 24 : index
    %14 = vector.load %arg5[%c0_18, %c24_19] : memref<8x32xf32, #tpu.memory_space<vmem>>, vector<8x8xf32>
    %c64_20 = arith.constant 64 : index
    %c0_21 = arith.constant 0 : index
    %15 = vector.load %arg9[%c64_20, %c0_21] : memref<72x8xf32, #tpu.memory_space<vmem>>, vector<8x8xf32>
    tpu.vector_store %arg9[%c64_20, %c0_21], %14 {strides = array<i32>} : memref<72x8xf32, #tpu.memory_space<vmem>>, vector<8x8xf32>,
    %c0_22 = arith.constant 0 : index
    %c0_23 = arith.constant 0 : index
    %16 = vector.load %arg7[%c0_22, %c0_23] : memref<72x8xf32, #tpu.memory_space<vmem>>, vector<72x8xf32>
    %c0_24 = arith.constant 0 : index
    %c0_25 = arith.constant 0 : index
    %17 = vector.load %arg8[%c0_24, %c0_25] : memref<72x8xf32, #tpu.memory_space<vmem>>, vector<72x8xf32>
    %c0_26 = arith.constant 0 : index
    %c0_27 = arith.constant 0 : index
    %18 = vector.load %arg9[%c0_26, %c0_27] : memref<72x8xf32, #tpu.memory_space<vmem>>, vector<72x8xf32>
    %cst_28 = arith.constant dense<0.000000e+00> : vector<72x72xf32>
    %19 = tpu.matmul %17, %16, %cst_28 {dimension_numbers = #tpu.dot_dimension_numbers<[1], [1], [0], [0], [0, 0, 1, 0], [], []>} : vector<72x8xf32>, vector<72x8xf32>, vector<72x72xf32> -> vector<72x72xf32>
    %cst_29 = arith.constant dense<0xFF800000> : vector<72xf32>
    %20 = vector.multi_reduction <maximumf>, %19, %cst_29 [0] : vector<72x72xf32> to vector<72xf32>
    %21 = vector.shape_cast %20 : vector<72xf32> to vector<1x72xf32>
    %22 = vector.broadcast %21 : vector<1x72xf32> to vector<72x72xf32>
    %23 = arith.subf %19, %22 : vector<72x72xf32>
    %24 = math.exp %23 : vector<72x72xf32>
    %cst_30 = arith.constant dense<0.000000e+00> : vector<72xf32>
    %25 = vector.multi_reduction <add>, %24, %cst_30 [0] : vector<72x72xf32> to vector<72xf32>
    %26 = vector.shape_cast %25 : vector<72xf32> to vector<1x72xf32>
    %cst_31 = arith.constant dense<0.000000e+00> : vector<8x72xf32>
    %27 = tpu.matmul %18, %24, %cst_31 {dimension_numbers = #tpu.dot_dimension_numbers<[0], [0], [1], [1], [0, 1, 1, 1], [], []>} : vector<72x8xf32>, vector<72x72xf32>, vector<8x72xf32> -> vector<8x72xf32>
    %28 = tpu.reciprocal %26 : vector<1x72xf32> -> vector<1x72xf32>
    %29 = vector.broadcast %28 : vector<1x72xf32> to vector<8x72xf32>
    %30 = arith.mulf %27, %29 : vector<8x72xf32>
    %c0_32 = arith.constant 0 : index
    %c0_33 = arith.constant 0 : index
    %31 = vector.load %arg10[%c0_32, %c0_33] : memref<8x72xf32, #tpu.memory_space<vmem>>, vector<8x72xf32>
    tpu.vector_store %arg10[%c0_32, %c0_33], %30 {strides = array<i32>} : memref<8x72xf32, #tpu.memory_space<vmem>>, vector<8x72xf32>,
    %c4 = arith.constant 4 : index
    %c32 = arith.constant 32 : index
    %32 = vector.load %arg10[%c4, %c32] : memref<8x72xf32, #tpu.memory_space<vmem>>, vector<1x32xf32>
    %c0_34 = arith.constant 0 : index
    %c0_35 = arith.constant 0 : index
    %33 = vector.load %arg6[%c0_34, %c0_35] : memref<8x32xf32, #tpu.memory_space<vmem>>, vector<1x32xf32>
    tpu.vector_store %arg6[%c0_34, %c0_35], %32 {strides = array<i32>} : memref<8x32xf32, #tpu.memory_space<vmem>>, vector<1x32xf32>,
    %c4_36 = arith.constant 4 : index
    %c64_37 = arith.constant 64 : index
    %34 = vector.load %arg10[%c4_36, %c64_37] : memref<8x72xf32, #tpu.memory_space<vmem>>, vector<1x8xf32>
    %c1 = arith.constant 1 : index
    %c0_38 = arith.constant 0 : index
    %35 = vector.load %arg6[%c1, %c0_38] : memref<8x32xf32, #tpu.memory_space<vmem>>, vector<1x8xf32>
    tpu.vector_store %arg6[%c1, %c0_38], %34 {strides = array<i32>} : memref<8x32xf32, #tpu.memory_space<vmem>>, vector<1x8xf32>,
    %c5 = arith.constant 5 : index
    %c0_39 = arith.constant 0 : index
    %36 = vector.load %arg10[%c5, %c0_39] : memref<8x72xf32, #tpu.memory_space<vmem>>, vector<1x24xf32>
    %c1_40 = arith.constant 1 : index
    %c8 = arith.constant 8 : index
    %37 = vector.load %arg6[%c1_40, %c8] : memref<8x32xf32, #tpu.memory_space<vmem>>, vector<1x24xf32>
    tpu.vector_store %arg6[%c1_40, %c8], %36 {strides = array<i32>} : memref<8x32xf32, #tpu.memory_space<vmem>>, vector<1x24xf32>,
    %c5_41 = arith.constant 5 : index
    %c24_42 = arith.constant 24 : index
    %38 = vector.load %arg10[%c5_41, %c24_42] : memref<8x72xf32, #tpu.memory_space<vmem>>, vector<1x32xf32>
    %c2 = arith.constant 2 : index
    %c0_43 = arith.constant 0 : index
    %39 = vector.load %arg6[%c2, %c0_43] : memref<8x32xf32, #tpu.memory_space<vmem>>, vector<1x32xf32>
    tpu.vector_store %arg6[%c2, %c0_43], %38 {strides = array<i32>} : memref<8x32xf32, #tpu.memory_space<vmem>>, vector<1x32xf32>,
    %c5_44 = arith.constant 5 : index
    %c56 = arith.constant 56 : index
    %40 = vector.load %arg10[%c5_44, %c56] : memref<8x72xf32, #tpu.memory_space<vmem>>, vector<1x16xf32>
    %c3 = arith.constant 3 : index
    %c0_45 = arith.constant 0 : index
    %41 = vector.load %arg6[%c3, %c0_45] : memref<8x32xf32, #tpu.memory_space<vmem>>, vector<1x16xf32>
    tpu.vector_store %arg6[%c3, %c0_45], %40 {strides = array<i32>} : memref<8x32xf32, #tpu.memory_space<vmem>>, vector<1x16xf32>,
    %c6 = arith.constant 6 : index
    %c0_46 = arith.constant 0 : index
    %42 = vector.load %arg10[%c6, %c0_46] : memref<8x72xf32, #tpu.memory_space<vmem>>, vector<1x16xf32>
    %c3_47 = arith.constant 3 : index
    %c16 = arith.constant 16 : index
    %43 = vector.load %arg6[%c3_47, %c16] : memref<8x32xf32, #tpu.memory_space<vmem>>, vector<1x16xf32>
    tpu.vector_store %arg6[%c3_47, %c16], %42 {strides = array<i32>} : memref<8x32xf32, #tpu.memory_space<vmem>>, vector<1x16xf32>,
    %c6_48 = arith.constant 6 : index
    %c16_49 = arith.constant 16 : index
    %44 = vector.load %arg10[%c6_48, %c16_49] : memref<8x72xf32, #tpu.memory_space<vmem>>, vector<1x32xf32>
    %c4_50 = arith.constant 4 : index
    %c0_51 = arith.constant 0 : index
    %45 = vector.load %arg6[%c4_50, %c0_51] : memref<8x32xf32, #tpu.memory_space<vmem>>, vector<1x32xf32>
    tpu.vector_store %arg6[%c4_50, %c0_51], %44 {strides = array<i32>} : memref<8x32xf32, #tpu.memory_space<vmem>>, vector<1x32xf32>,
    %c6_52 = arith.constant 6 : index
    %c48 = arith.constant 48 : index
    %46 = vector.load %arg10[%c6_52, %c48] : memref<8x72xf32, #tpu.memory_space<vmem>>, vector<1x24xf32>
    %c5_53 = arith.constant 5 : index
    %c0_54 = arith.constant 0 : index
    %47 = vector.load %arg6[%c5_53, %c0_54] : memref<8x32xf32, #tpu.memory_space<vmem>>, vector<1x24xf32>
    tpu.vector_store %arg6[%c5_53, %c0_54], %46 {strides = array<i32>} : memref<8x32xf32, #tpu.memory_space<vmem>>, vector<1x24xf32>,
    %c7 = arith.constant 7 : index
    %c0_55 = arith.constant 0 : index
    %48 = vector.load %arg10[%c7, %c0_55] : memref<8x72xf32, #tpu.memory_space<vmem>>, vector<1x8xf32>
    %c5_56 = arith.constant 5 : index
    %c24_57 = arith.constant 24 : index
    %49 = vector.load %arg6[%c5_56, %c24_57] : memref<8x32xf32, #tpu.memory_space<vmem>>, vector<1x8xf32>
    tpu.vector_store %arg6[%c5_56, %c24_57], %48 {strides = array<i32>} : memref<8x32xf32, #tpu.memory_space<vmem>>, vector<1x8xf32>,
    %c7_58 = arith.constant 7 : index
    %c8_59 = arith.constant 8 : index
    %50 = vector.load %arg10[%c7_58, %c8_59] : memref<8x72xf32, #tpu.memory_space<vmem>>, vector<1x32xf32>
    %c6_60 = arith.constant 6 : index
    %c0_61 = arith.constant 0 : index
    %51 = vector.load %arg6[%c6_60, %c0_61] : memref<8x32xf32, #tpu.memory_space<vmem>>, vector<1x32xf32>
    tpu.vector_store %arg6[%c6_60, %c0_61], %50 {strides = array<i32>} : memref<8x32xf32, #tpu.memory_space<vmem>>, vector<1x32xf32>,
    %c7_62 = arith.constant 7 : index
    %c40 = arith.constant 40 : index
    %52 = vector.load %arg10[%c7_62, %c40] : memref<8x72xf32, #tpu.memory_space<vmem>>, vector<1x32xf32>
    %c7_63 = arith.constant 7 : index
    %c0_64 = arith.constant 0 : index
    %53 = vector.load %arg6[%c7_63, %c0_64] : memref<8x32xf32, #tpu.memory_space<vmem>>, vector<1x32xf32>
    tpu.vector_store %arg6[%c7_63, %c0_64], %52 {strides = array<i32>} : memref<8x32xf32, #tpu.memory_space<vmem>>, vector<1x32xf32>,
    return
  }
}

</mosaic_0001>

<bundles_post_ra>
// kernel: tpu_custom_call.1
= control target key start
LH: loop header
LB: loop body
LE: loop exit
PB: predicated region body
PF: predicated region fallthrough
CT: control target
= control target key end

     0   :  { %v856_v5 = vmov 0.0|0.0   ;;  %s857_s29 = smov 104   ;;  %s1133_s0 = inlined_call_operand.vmem [shape: f32[64,32], index: 0, kind: input, shape index: {}]   ;;  %s1134_s1 = inlined_call_operand.vmem [shape: f32[8,32], index: 1, kind: input, shape index: {}]   ;;  %s1135_s2 = inlined_call_operand.vmem [shape: f32[64,32], index: 2, kind: input, shape index: {}]   ;;  %s1136_s3 = inlined_call_operand.vmem [shape: f32[8,32], index: 3, kind: input, shape index: {}]   ;;  %s1137_s4 = inlined_call_operand.vmem [shape: f32[64,32], index: 4, kind: input, shape index: {}]   ;;  %s1138_s5 = inlined_call_operand.vmem [shape: f32[8,32], index: 5, kind: input, shape index: {}]   ;;  %s1139_s6 = inlined_call_operand.hbm [shape: f32[8,32], index: 6, kind: output, shape index: {}]  }
   0x1   :  { %v24_v0 = vld [vmem:[%s1133_s0] sm:$0xff]  ;;  %v26_v1 = vld [vmem:[%s1133_s0 + $0x10] sm:$0xff]  ;;  %v25_v2 = vld [vmem:[%s1133_s0 + $0x8] sm:$0xff]  ;;  %769 = vmatprep.subr.bf16.mxu0 %v856_v5  ;;  %785 = vmatprep.subr.bf16.mxu1 %v856_v5 }
   0x2   :  { %v32_v3 = vmul.f32 0.35355338, %v24_v0  ;;  %v34_v4 = vmul.f32 0.35355338, %v26_v1  ;;  %v27_v6 = vld [vmem:[%s1133_s0 + $0x18] sm:$0xff]  ;;  %v29_v9 = vld [vmem:[%s1133_s0 + $0x28] sm:$0xff] }
   0x3   :  { %v33_v7 = vmul.f32 0.35355338, %v25_v2  ;;  %v35_v8 = vmul.f32 0.35355338, %v27_v6  ;;  %v28_v10 = vld [vmem:[%s1133_s0 + $0x20] sm:$0xff]  ;;  %v31_v13 = vld [vmem:[%s1133_s0 + $0x38] sm:$0xff] }
   0x4   :  { %48 = vrot.lane.b32.xlu0 %v32_v3, %s857_s29  ;;  %52 = vrot.lane.b32.xlu1 %v34_v4, %s857_s29  ;;  %v37_v11 = vmul.f32 0.35355338, %v29_v9  ;;  %v36_v12 = vmul.f32 0.35355338, %v28_v10  ;;  %v30_v14 = vld [vmem:[%s1133_s0 + $0x30] sm:$0xff] }
   0x8   :  { %50 = vrot.lane.b32.xlu0 %v33_v7, %s857_s29  ;;  %54 = vrot.lane.b32.xlu1 %v35_v8, %s857_s29 }
   0x9   :  { %11 = vsyncpa [#allocation7], 0  ;;  %v39_v15 = vmul.f32 0.35355338, %v31_v13  ;;  %v38_v16 = vmul.f32 0.35355338, %v30_v14 }
   0xa   :  { %v81_v17 = vld [vmem:[%s1134_s1] sm:$0xff]  ;;  %v89_v20 = vld [vmem:[%s1135_s2 + $0x8] sm:$0xff]  ;;  %v90_v21 = vld [vmem:[%s1135_s2 + $0x10] sm:$0xff]  ;;  %vm858_vm0 = vmmov 0   ;;  %v859_v28 = vmov 0.0   ;;  %vm72_vm1 = vcmask 64512  }
   0xb   :  { %v82_v18 = vmul.f32 0.35355338, %v81_v17  ;;  %v88_v19 = vld [vmem:[%s1135_s2] sm:$0xff]  ;;  %v91_v22 = vld [vmem:[%s1135_s2 + $0x18] sm:$0xff]  ;;  %v93_v24 = vld [vmem:[%s1135_s2 + $0x28] sm:$0xff]  ;;  %721 = vmatprep.mubr.msk.f32.mxu0 %vm858_vm0, %v859_v28  ;;  %766 = vmatprep.mubr.msk.f32.mxu1 %vm858_vm0, %v859_v28  ;;  %vm387_vm3 = vcmask 588800  }
   0xc   :  { %58 = vrot.lane.b32.xlu1 %v37_v11, %s857_s29  ;;  %56 = vrot.lane.b32.xlu0 %v36_v12, %s857_s29  ;;  %v92_v23 = vld [vmem:[%s1135_s2 + $0x20] sm:$0xff]  ;;  %v94_v25 = vld [vmem:[%s1135_s2 + $0x30] sm:$0xff]  ;;  %vm1028_vm2 = vmpackc.low %vm72_vm1, %vm72_vm1  ;;  %s862_s23 = smov 80   ;;  %s863_s24 = smov 96   ;;  %vm581_vm4 = vcmask 57344   ;;  %vm601_vm5 = vcmask 122880  }
   0xd   :  { %v95_v26 = vld [vmem:[%s1135_s2 + $0x38] sm:$0xff]  ;;  %v136_v27 = vld [vmem:[%s1136_s3] sm:$0xff]  ;;  %v143_v30 = vld [vmem:[%s1137_s4 + $0x8] sm:$0xff]  ;;  %s864_s25 = smov 8   ;;  %s865_s26 = smov 16   ;;  %vm621_vm6 = vcmask 188416  }
   0xe   :  { %v142_v29 = vld [vmem:[%s1137_s4] sm:$0xff]  ;;  %v144_v31 = vld [vmem:[%s1137_s4 + $0x10] sm:$0xff]  ;;  %v145_v32 = vld [vmem:[%s1137_s4 + $0x18] sm:$0xff]  ;;  %s866_s27 = smov 112   ;;  %s867_s28 = smov 24   ;;  %vm574_vm7 = vcmask 253952  }
   0xf   :  { %v146_v33 = vld [vmem:[%s1137_s4 + $0x20] sm:$0xff]  ;;  %v147_v34 = vld [vmem:[%s1137_s4 + $0x28] sm:$0xff]  ;;  %v148_v35 = vld [vmem:[%s1137_s4 + $0x30] sm:$0xff]  ;;  %s868_s30 = smov 120   ;;  %s869_s7 = smov 88   ;;  %vm588_vm8 = vcmask 254016  }
  0x10   :  { %62 = vrot.lane.b32.xlu1 %v39_v15, %s857_s29  ;;  %60 = vrot.lane.b32.xlu0 %v38_v16, %s857_s29  ;;  %v149_v36 = vld [vmem:[%s1137_s4 + $0x38] sm:$0xff]  ;;  %v190_v37 = vld [vmem:[%s1138_s5] sm:$0xff]  ;;  %s860_s4 = smov 64   ;;  %s861_s5 = smov 72   ;;  %vm608_vm9 = vcmask 254080   ;;  %vm628_vm10 = vcmask 254144  }
  0x14   :  { %84 = vrot.lane.b32.xlu0 %v82_v18, %s857_s29  ;;  %104 = vrot.lane.b32.xlu1 %v88_v19, %s857_s29 }
  0x18   :  { %106 = vrot.lane.b32.xlu0 %v89_v20, %s857_s29  ;;  %108 = vrot.lane.b32.xlu1 %v90_v21, %s857_s29 }
  0x1c   :  { %110 = vrot.lane.b32.xlu0 %v91_v22, %s857_s29  ;;  %112 = vrot.lane.b32.xlu1 %v92_v23, %s857_s29 }
  0x20   :  { %114 = vrot.lane.b32.xlu0 %v93_v24, %s857_s29  ;;  %116 = vrot.lane.b32.xlu1 %v94_v25, %s857_s29 }
  0x24   :  { %118 = vrot.lane.b32.xlu0 %v95_v26, %s857_s29  ;;  %138 = vrot.lane.b32.xlu1 %v136_v27, %s857_s29 }
  0x28   :  { %158 = vrot.lane.b32.xlu0 %v142_v29, %s857_s29  ;;  %160 = vrot.lane.b32.xlu1 %v143_v30, %s857_s29 }
  0x2c   :  { %162 = vrot.lane.b32.xlu0 %v144_v31, %s857_s29  ;;  %164 = vrot.lane.b32.xlu1 %v145_v32, %s857_s29 }
  0x30   :  { %166 = vrot.lane.b32.xlu0 %v146_v33, %s857_s29  ;;  %168 = vrot.lane.b32.xlu1 %v147_v34, %s857_s29 }
  0x34   :  { %170 = vrot.lane.b32.xlu0 %v148_v35, %s857_s29  ;;  %172 = vrot.lane.b32.xlu1 %v149_v36, %s857_s29 }
  0x38   :  { %192 = vrot.lane.b32.xlu0 %v190_v37, %s857_s29 }
  0x76   :  { %v49_v38 = vpop.permute.xlu0 %48  ;;  %v53_v39 = vpop.permute.xlu1 %52 }
  0x77   :  { %73 = vst.msk [vmem:[#allocation2] sm:$0xff] %vm72_vm1, %v49_v38  ;;  %75 = vst.msk [vmem:[#allocation2 + $0x10] sm:$0xff] %vm72_vm1, %v53_v39 }
  0x7a   :  { %v51_v40 = vpop.permute.xlu0 %50  ;;  %v55_v41 = vpop.permute.xlu1 %54 }
  0x7b   :  { %74 = vst.msk [vmem:[#allocation2 + $0x8] sm:$0xff] %vm72_vm1, %v51_v40  ;;  %76 = vst.msk [vmem:[#allocation2 + $0x18] sm:$0xff] %vm72_vm1, %v55_v41 }
  0x7e   :  { %v59_v42 = vpop.permute.xlu1 %58  ;;  %v57_v43 = vpop.permute.xlu0 %56  ;;  %v196_v44 = vld [vmem:[#allocation2] sm:$0xff]  ;;  %v198_v52 = vld [vmem:[#allocation2 + $0x10] sm:$0xff] }
  0x7f   :  { %78 = vst.msk [vmem:[#allocation2 + $0x28] sm:$0xff] %vm72_vm1, %v59_v42  ;;  %77 = vst.msk [vmem:[#allocation2 + $0x20] sm:$0xff] %vm72_vm1, %v57_v43 }
  0x82   :  { %v197_v45 = vld [vmem:[#allocation2 + $0x8] sm:$0xff]  ;;  %v63_v47 = vpop.permute.xlu1 %62  ;;  %v61_v48 = vpop.permute.xlu0 %60  ;;  %v199_v53 = vld [vmem:[#allocation2 + $0x18] sm:$0xff] }
  0x83   :  { %v770_v49 = vpack.c.bf16 %v197_v45, %v196_v44  ;;  %80 = vst.msk [vmem:[#allocation2 + $0x38] sm:$0xff] %vm72_vm1, %v63_v47  ;;  %79 = vst.msk [vmem:[#allocation2 + $0x30] sm:$0xff] %vm72_vm1, %v61_v48  ;;  %v774_v56 = vpack.c.bf16 %v199_v53, %v198_v52 }
  0x85   :  { %772 = vmatpush3.bf16.xpose.msk.msra.mxu0 %vm1028_vm2, %v770_v49 }
  0x86   :  { %773 = vmatprep.subr.bf16.mxu0 %v856_v5  ;;  %v85_v50 = vpop.permute.xlu0 %84  ;;  %v105_v51 = vpop.permute.xlu1 %104  ;;  %v200_v57 = vld [vmem:[#allocation2 + $0x20] sm:$0xff]  ;;  %v201_v58 = vld [vmem:[#allocation2 + $0x28] sm:$0xff] }
  0x87   :  { %87 = vst.msk [vmem:[#allocation2 + $0x40] sm:$0xff] %vm72_vm1, %v85_v50  ;;  %128 = vst.msk [vmem:[#allocation3] sm:$0xff] %vm72_vm1, %v105_v51  ;;  %v778_v61 = vpack.c.bf16 %v201_v58, %v200_v57 }
  0x8a   :  { %v107_v54 = vpop.permute.xlu0 %106  ;;  %v109_v55 = vpop.permute.xlu1 %108  ;;  %v202_v0 = vld [vmem:[#allocation2 + $0x30] sm:$0xff]  ;;  %v203_v1 = vld [vmem:[#allocation2 + $0x38] sm:$0xff] }
  0x8b   :  { %129 = vst.msk [vmem:[#allocation3 + $0x8] sm:$0xff] %vm72_vm1, %v107_v54  ;;  %130 = vst.msk [vmem:[#allocation3 + $0x10] sm:$0xff] %vm72_vm1, %v109_v55  ;;  %v782_v4 = vpack.c.bf16 %v203_v1, %v202_v0 }
  0x8d   :  { %776 = vmatpush3.bf16.xpose.msk.msra.mxu0 %vm1028_vm2, %v774_v56 }
  0x8e   :  { %777 = vmatprep.subr.bf16.mxu0 %v856_v5  ;;  %v111_v59 = vpop.permute.xlu0 %110  ;;  %v113_v60 = vpop.permute.xlu1 %112  ;;  %v204_v6 = vld [vmem:[#allocation2 + $0x40] sm:$0xff]  ;;  %v205_v7 = vld [vmem:[#allocation3] sm:$0xff] }
  0x8f   :  { %131 = vst.msk [vmem:[#allocation3 + $0x18] sm:$0xff] %vm72_vm1, %v111_v59  ;;  %132 = vst.msk [vmem:[#allocation3 + $0x20] sm:$0xff] %vm72_vm1, %v113_v60 }
  0x92   :  { %v115_v62 = vpop.permute.xlu0 %114  ;;  %v117_v63 = vpop.permute.xlu1 %116  ;;  %v206_v8 = vld [vmem:[#allocation3 + $0x8] sm:$0xff]  ;;  %v207_v9 = vld [vmem:[#allocation3 + $0x10] sm:$0xff] }
  0x93   :  { %133 = vst.msk [vmem:[#allocation3 + $0x28] sm:$0xff] %vm72_vm1, %v115_v62  ;;  %134 = vst.msk [vmem:[#allocation3 + $0x30] sm:$0xff] %vm72_vm1, %v117_v63 }
  0x95   :  { %780 = vmatpush3.bf16.xpose.msk.msra.mxu0 %vm1028_vm2, %v778_v61 }
  0x96   :  { %781 = vmatprep.subr.bf16.mxu0 %v856_v5  ;;  %v119_v2 = vpop.permute.xlu0 %118  ;;  %v139_v3 = vpop.permute.xlu1 %138  ;;  %v208_v10 = vld [vmem:[#allocation3 + $0x18] sm:$0xff]  ;;  %v209_v11 = vld [vmem:[#allocation3 + $0x20] sm:$0xff] }
  0x97   :  { %135 = vst.msk [vmem:[#allocation3 + $0x38] sm:$0xff] %vm72_vm1, %v119_v2  ;;  %141 = vst.msk [vmem:[#allocation3 + $0x40] sm:$0xff] %vm72_vm1, %v139_v3 }
  0x9a   :  { %v210_v12 = vld [vmem:[#allocation3 + $0x28] sm:$0xff]  ;;  %v159_v13 = vpop.permute.xlu0 %158  ;;  %v161_v14 = vpop.permute.xlu1 %160  ;;  %v211_v15 = vld [vmem:[#allocation3 + $0x30] sm:$0xff] }
  0x9b   :  { %182 = vst.msk [vmem:[#allocation4] sm:$0xff] %vm72_vm1, %v159_v13  ;;  %183 = vst.msk [vmem:[#allocation4 + $0x8] sm:$0xff] %vm72_vm1, %v161_v14 }
  0x9d   :  { %784 = vmatpush3.bf16.xpose.msk.msra.mxu0 %vm1028_vm2, %v782_v4 }
  0x9e   :  { %719 = vmatprep.subr.mxu0 %v859_v28  ;;  %v163_v16 = vpop.permute.xlu0 %162  ;;  %v165_v17 = vpop.permute.xlu1 %164  ;;  %v212_v18 = vld [vmem:[#allocation3 + $0x38] sm:$0xff]  ;;  %v213_v22 = vld [vmem:[#allocation3 + $0x40] sm:$0xff] }
  0x9f   :  { %184 = vst.msk [vmem:[#allocation4 + $0x10] sm:$0xff] %vm72_vm1, %v163_v16  ;;  %185 = vst.msk [vmem:[#allocation4 + $0x18] sm:$0xff] %vm72_vm1, %v165_v17 }
  0xa2   :  { %v214_v19 = vld [vmem:[#allocation4] sm:$0xff]  ;;  %v167_v20 = vpop.permute.xlu0 %166  ;;  %v169_v21 = vpop.permute.xlu1 %168  ;;  %v215_v23 = vld [vmem:[#allocation4 + $0x8] sm:$0xff] }
  0xa3   :  { %461 = vxpose.xlu1.b32.start [1/9] (short) (narrow) %v214_v19, 8  ;;  %186 = vst.msk [vmem:[#allocation4 + $0x20] sm:$0xff] %vm72_vm1, %v167_v20  ;;  %187 = vst.msk [vmem:[#allocation4 + $0x28] sm:$0xff] %vm72_vm1, %v169_v21 }
  0xa5   :  { %720 = vmatpush3.xpose.msk.msra.mxu0 %vm72_vm1, %v204_v6 }
  0xa6   :  { %v171_v24 = vpop.permute.xlu0 %170  ;;  %v173_v25 = vpop.permute.xlu1 %172  ;;  %v216_v26 = vld [vmem:[#allocation4 + $0x10] sm:$0xff]  ;;  %v217_v29 = vld [vmem:[#allocation4 + $0x18] sm:$0xff] }
  0xa7   :  { %462 = vxpose.xlu1.b32.cont [2/9] (short) (narrow) %v215_v23, 8  ;;  %188 = vst.msk [vmem:[#allocation4 + $0x30] sm:$0xff] %vm72_vm1, %v171_v24  ;;  %189 = vst.msk [vmem:[#allocation4 + $0x38] sm:$0xff] %vm72_vm1, %v173_v25 }
  0xa8   :  { %722 = vmatmul.mubr.msk.f32.vlgmr.msra.gmra.mrb[0].mxu0 %vm72_vm1, %v205_v7 }
  0xa9   :  { %724 = vmatprep.mubr.msk.f32.mxu0 %vm858_vm0, %v859_v28 }
  0xaa   :  { %v193_v27 = vpop.permute.xlu0 %192  ;;  %v218_v30 = vld [vmem:[#allocation4 + $0x20] sm:$0xff]  ;;  %v219_v31 = vld [vmem:[#allocation4 + $0x28] sm:$0xff] }
  0xab   :  { %463 = vxpose.xlu1.b32.cont [3/9] (short) (narrow) %v216_v26, 8  ;;  %195 = vst.msk [vmem:[#allocation4 + $0x40] sm:$0xff] %vm72_vm1, %v193_v27 }
  0xac   :  { %725 = vmatmul.mubr.msk.f32.gmra.mrb[2].mxu0 %vm72_vm1, %v206_v8 }
  0xad   :  { %727 = vmatprep.mubr.msk.f32.mxu0 %vm858_vm0, %v859_v28 }
  0xae   :  { %v220_v32 = vld [vmem:[#allocation4 + $0x30] sm:$0xff]  ;;  %v221_v33 = vld [vmem:[#allocation4 + $0x38] sm:$0xff] }
  0xaf   :  { %464 = vxpose.xlu1.b32.cont [4/9] (short) (narrow) %v217_v29, 8 }
  0xb0   :  { %728 = vmatmul.mubr.msk.f32.gmra.mrb[4].mxu0 %vm72_vm1, %v207_v9 }
  0xb1   :  { %730 = vmatprep.mubr.msk.f32.mxu0 %vm858_vm0, %v859_v28 }
  0xb2   :  { %v222_v34 = vld [vmem:[#allocation4 + $0x40] sm:$0xff] }
  0xb3   :  { %465 = vxpose.xlu1.b32.cont [5/9] (short) (narrow) %v218_v30, 8 }
  0xb4   :  { %731 = vmatmul.mubr.msk.f32.gmra.mrb[6].mxu0 %vm72_vm1, %v208_v10 }
  0xb5   :  { %733 = vmatprep.mubr.msk.f32.mxu0 %vm858_vm0, %v859_v28 }
  0xb7   :  { %466 = vxpose.xlu1.b32.cont [6/9] (short) (narrow) %v219_v31, 8 }
  0xb8   :  { %734 = vmatmul.mubr.msk.f32.gmra.mrb[8].mxu0 %vm72_vm1, %v209_v11 }
  0xb9   :  { %736 = vmatprep.mubr.msk.f32.mxu0 %vm858_vm0, %v859_v28 }
  0xbb   :  { %467 = vxpose.xlu1.b32.cont [7/9] (short) (narrow) %v220_v32, 8 }
  0xbc   :  { %737 = vmatmul.mubr.msk.f32.gmra.mrb[10].mxu0 %vm72_vm1, %v210_v12 }
  0xbd   :  { %739 = vmatprep.mubr.msk.f32.mxu0 %vm858_vm0, %v859_v28 }
  0xbf   :  { %468 = vxpose.xlu1.b32.cont [8/9] (short) (narrow) %v221_v33, 8 }
  0xc0   :  { %740 = vmatmul.mubr.msk.f32.gmra.mrb[12].mxu0 %vm72_vm1, %v211_v15 }
  0xc1   :  { %742 = vmatprep.mubr.msk.f32.mxu0 %vm858_vm0, %v859_v28 }
  0xc3   :  { %469 = vxpose.xlu1.b32.end [9/9] (short) (narrow) %v222_v34, 8 }
  0xc4   :  { %743 = vmatmul.mubr.msk.f32.gmra.mrb[14].mxu0 %vm72_vm1, %v212_v18 }
  0xc5   :  { %745 = vmatprep.mubr.msk.f32.mxu0 %vm858_vm0, %v859_v28 }
  0xc8   :  { %746 = vmatmul.mubr.msk.f32.gmra.mrb[16].mxu0 %vm72_vm1, %v213_v22 }
 0x17b   :  { %v343_v35 = vpop.f32.mrb[0].mxu0 }
 0x17c   :  { %v723_v36 = vpop.f32.mrb[1].mxu0  ;;  %v388_v44 = vsel %vm387_vm3, %v343_v35, -inf }
 0x17f   :  { %v348_v37 = vpop.f32.mrb[2].mxu0 }
 0x180   :  { %v726_v38 = vpop.f32.mrb[3].mxu0  ;;  %v389_v49 = vsel %vm387_vm3, %v348_v37, -inf }
 0x183   :  { %v353_v39 = vpop.f32.mrb[4].mxu0 }
 0x184   :  { %v729_v40 = vpop.f32.mrb[5].mxu0  ;;  %v390_v54 = vsel %vm387_vm3, %v353_v39, -inf }
 0x187   :  { %v358_v41 = vpop.f32.mrb[6].mxu0 }
 0x188   :  { %v732_v42 = vpop.f32.mrb[7].mxu0  ;;  %v391_v59 = vsel %vm387_vm3, %v358_v41, -inf }
 0x18b   :  { %v363_v43 = vpop.f32.mrb[8].mxu0 }
 0x18c   :  { %v392_v45 = vsel %vm387_vm3, %v363_v43, -inf  ;;  %v735_v46 = vpop.f32.mrb[9].mxu0 }
 0x18d   :  { %v393_v47 = vmax.f32 %v388_v44, %v392_v45 }
 0x18f   :  { %v368_v48 = vpop.f32.mrb[10].mxu0 }
 0x190   :  { %v394_v50 = vsel %vm387_vm3, %v368_v48, -inf  ;;  %v738_v51 = vpop.f32.mrb[11].mxu0 }
 0x191   :  { %v395_v52 = vmax.f32 %v389_v49, %v394_v50 }
 0x193   :  { %v373_v53 = vpop.f32.mrb[12].mxu0 }
 0x194   :  { %v396_v55 = vsel %vm387_vm3, %v373_v53, -inf  ;;  %v741_v56 = vpop.f32.mrb[13].mxu0 }
 0x195   :  { %v397_v57 = vmax.f32 %v390_v54, %v396_v55 }
 0x197   :  { %v378_v58 = vpop.f32.mrb[14].mxu0 }
 0x198   :  { %v398_v60 = vsel %vm387_vm3, %v378_v58, -inf  ;;  %v744_v61 = vpop.f32.mrb[15].mxu0 }
 0x199   :  { %v399_v62 = vmax.f32 %v391_v59, %v398_v60 }
 0x19b   :  { %v403_v63 = vmax.f32 %v397_v57, %v399_v62  ;;  %v383_v0 = vpop.f32.mrb[16].mxu0  ;;  %v477_v62 = vpop.trf.xlu1 }
 0x19c   :  { %v400_v1 = vsel %vm387_vm3, %v383_v0, -inf  ;;  %v747_v2 = vpop.f32.mrb[17].mxu0 }
 0x19d   :  { %v401_v3 = vmax.f32 %v393_v47, %v400_v1 }
 0x19f   :  { %v402_v4 = vmax.f32 %v401_v3, %v395_v52 }
 0x1a1   :  { %v404_v6 = vmax.f32 %v402_v4, %v403_v63 }
 0x1a3   :  { %v405_v7 = vrot.slane %v404_v6, 4 }
 0x1a5   :  { %v406_v8 = vmax.f32 %v404_v6, %v405_v7 }
 0x1a7   :  { %v407_v9 = vrot.slane %v406_v8, 2 }
 0x1a9   :  { %v408_v10 = vmax.f32 %v406_v8, %v407_v9 }
 0x1ab   :  { %v409_v11 = vrot.slane %v408_v10, 1 }
 0x1ad   :  { %v410_v12 = vmax.f32 %v408_v10, %v409_v11 }
 0x1af   :  { %v419_v13 = vsub.f32 %v383_v0, %v410_v12  ;;  %v411_v14 = vsub.f32 %v343_v35, %v410_v12  ;;  %v412_v15 = vsub.f32 %v348_v37, %v410_v12  ;;  %v413_v16 = vsub.f32 %v353_v39, %v410_v12 }
 0x1b0   :  { %v414_v17 = vsub.f32 %v358_v41, %v410_v12  ;;  %v415_v18 = vsub.f32 %v363_v43, %v410_v12  ;;  %v416_v19 = vsub.f32 %v368_v48, %v410_v12  ;;  %v417_v20 = vsub.f32 %v373_v53, %v410_v12 }
 0x1b1   :  { %v420_v21 = vmul.f32 1.442695, %v411_v14  ;;  %v422_v22 = vmul.f32 1.442695, %v412_v15  ;;  %v418_v23 = vsub.f32 %v378_v58, %v410_v12  ;;  %v424_v24 = vmul.f32 1.442695, %v413_v16 }
 0x1b2   :  { %v426_v25 = vmul.f32 1.442695, %v414_v17  ;;  %v428_v26 = vmul.f32 1.442695, %v415_v18  ;;  %v430_v27 = vmul.f32 1.442695, %v416_v19 }
 0x1b3   :  { %812 = vpow2.f32 %v420_v21  ;;  %v432_v29 = vmul.f32 1.442695, %v417_v20  ;;  %v434_v30 = vmul.f32 1.442695, %v418_v23  ;;  %v436_v31 = vmul.f32 1.442695, %v419_v13 }
 0x1b4   :  { %814 = vpow2.f32 %v422_v22 }
 0x1b5   :  { %816 = vpow2.f32 %v424_v24 }
 0x1b6   :  { %818 = vpow2.f32 %v426_v25 }
 0x1b7   :  { %820 = vpow2.f32 %v428_v26 }
 0x1b8   :  { %822 = vpow2.f32 %v430_v27 }
 0x1b9   :  { %824 = vpow2.f32 %v432_v29 }
 0x1ba   :  { %826 = vpow2.f32 %v434_v30 }
 0x1bb   :  { %828 = vpow2.f32 %v436_v31 }
 0x1bd   :  { %v813_v32 = vpop.eup %812 }
 0x1be   :  { %v815_v33 = vpop.eup %814  ;;  %v438_v34 = vsel %vm387_vm3, %v813_v32, 0.0 }
 0x1bf   :  { %v817_v35 = vpop.eup %816  ;;  %v439_v36 = vsel %vm387_vm3, %v815_v33, 0.0  ;;  %v786_v37 = vpack.c.bf16 %v815_v33, %v813_v32 }
 0x1c0   :  { %v819_v38 = vpop.eup %818  ;;  %v440_v39 = vadd.f32 %v439_v36, %v438_v34  ;;  %v441_v41 = vsel %vm387_vm3, %v817_v35, 0.0 }
 0x1c1   :  { %v821_v40 = vpop.eup %820  ;;  %787 = vmatpush3.bf16.msra.mxu1 %v786_v37  ;;  %v789_v42 = vpack.c.bf16 %v819_v38, %v817_v35  ;;  %v443_v46 = vsel %vm387_vm3, %v819_v38, 0.0 }
 0x1c2   :  { %v823_v43 = vpop.eup %822  ;;  %788 = vmatprep.subr.bf16.mxu1 %v856_v5  ;;  %v442_v44 = vadd.f32 %v441_v41, %v440_v39  ;;  %v445_v50 = vsel %vm387_vm3, %v821_v40, 0.0 }
 0x1c3   :  { %v825_v45 = vpop.eup %824  ;;  %v792_v47 = vpack.c.bf16 %v823_v43, %v821_v40  ;;  %v447_v53 = vsel %vm387_vm3, %v823_v43, 0.0 }
 0x1c4   :  { %v827_v48 = vpop.eup %826  ;;  %v444_v49 = vadd.f32 %v443_v46, %v442_v44  ;;  %v449_v55 = vsel %vm387_vm3, %v825_v45, 0.0 }
 0x1c5   :  { %790 = vmatpush3.bf16.msra.mxu1 %v789_v42  ;;  %v795_v51 = vpack.c.bf16 %v827_v48, %v825_v45  ;;  %v829_v56 = vpop.eup %828  ;;  %v451_v58 = vsel %vm387_vm3, %v827_v48, 0.0 }
 0x1c6   :  { %791 = vmatprep.subr.bf16.mxu1 %v856_v5  ;;  %v446_v52 = vadd.f32 %v445_v50, %v444_v49  ;;  %v453_v60 = vsel %vm387_vm3, %v829_v56, 0.0 }
 0x1c8   :  { %v448_v54 = vadd.f32 %v447_v53, %v446_v52 }
 0x1c9   :  { %793 = vmatpush3.bf16.msra.mxu1 %v792_v47 }
 0x1ca   :  { %794 = vmatprep.subr.bf16.mxu1 %v856_v5  ;;  %v450_v57 = vadd.f32 %v449_v55, %v448_v54 }
 0x1cc   :  { %v452_v59 = vadd.f32 %v451_v58, %v450_v57 }
 0x1cd   :  { %796 = vmatpush3.bf16.msra.mxu1 %v795_v51 }
 0x1ce   :  { %764 = vmatprep.subr.mxu1 %v859_v28  ;;  %v454_v61 = vadd.f32 %v453_v60, %v452_v59 }
 0x1d0   :  { %v455_v63 = vrot.slane %v454_v61, 4 }
 0x1d1   :  { %765 = vmatpush3.msra.mxu1 %v829_v56 }
 0x1d2   :  { %767 = vmatmul.mubr.msk.f32.vlgmr.msra.gmra.mrb[0].mxu1 %vm387_vm3, %v477_v62  ;;  %v456_v0 = vadd.f32 %v455_v63, %v454_v61 }
 0x1d4   :  { %v457_v1 = vrot.slane %v456_v0, 2 }
 0x1d6   :  { %v458_v2 = vadd.f32 %v457_v1, %v456_v0 }
 0x1d8   :  { %v459_v3 = vrot.slane %v458_v2, 1 }
 0x1da   :  { %v460_v5 = vadd.f32 %v459_v3, %v458_v2 }
 0x1dc   :  { %830 = vrcp.f32 %v460_v5 }
 0x1e6   :  { %v831_v4 = vpop.eup %830 }
 0x2a5   :  { %v562_v6 = vpop.f32.mrb[0].mxu1 }
 0x2a6   :  { %v567_v7 = vmul.f32 %v831_v4, %v562_v6  ;;  %v768_v8 = vpop.f32.mrb[1].mxu1 }
 0x2a8   :  { %568 = vst.msk [vmem:[#allocation5] sm:$0xff] %vm387_vm3, %v567_v7 }
 0x2af   :  { %v576_v9 = vld [vmem:[#allocation5 + $0x4] sm:$0x1]  ;;  %v596_v28 = vld [vmem:[#allocation5 + $0x5] sm:$0x1]  ;;  %v616_v10 = vld [vmem:[#allocation5 + $0x6] sm:$0x1] }
 0x2b0   :  { %578 = vrot.lane.b32.xlu0 %v576_v9, %s860_s4  ;;  %v569_v11 = vld [vmem:[#allocation5 + $0x4] sm:$0x1]  ;;  %v583_v12 = vld [vmem:[#allocation5 + $0x5] sm:$0x1]  ;;  %v603_v14 = vld [vmem:[#allocation5 + $0x6] sm:$0x1] }
 0x2b1   :  { %v590_v13 = vld [vmem:[#allocation5 + $0x5] sm:$0x1]  ;;  %v610_v15 = vld [vmem:[#allocation5 + $0x6] sm:$0x1]  ;;  %v623_v16 = vld [vmem:[#allocation5 + $0x7] sm:$0x1] }
 0x2b2   :  { %v630_v17 = vld [vmem:[#allocation5 + $0x7] sm:$0x1] }
 0x2b3   :  { %v636_v18 = vld [vmem:[#allocation5 + $0x7] sm:$0x1] }
 0x2b4   :  { %598 = vrot.lane.b32.xlu0 %v596_v28, %s861_s5 }
 0x2b8   :  { %618 = vrot.lane.b32.xlu0 %v616_v10, %s862_s23 }
 0x2bc   :  { %571 = vrot.lane.b32.xlu0 %v569_v11, %s863_s24 }
 0x2c0   :  { %585 = vrot.lane.b32.xlu0 %v583_v12, %s864_s25 }
 0x2c4   :  { %592 = vrot.lane.b32.xlu0 %v590_v13, %s857_s29  ;;  %s870_s29 = smov [#allocation6]  }
 0x2c5   :  { %s648_s8 = sshll.u32 %s870_s29, 4  ;;  %s649_s8 = int_to_ptr.vmem [resolvable:$true] %s648_s8 }
 0x2c6   :  { %s832_s9 = scalar_lea.vmem %s649_s8, 128  ;;  %p837_p1 = scmp.lt.s32.totalorder %s649_s8, %s649_s8 }
 0x2c7   :  { %p833_p0 = scmp.ne.s32.totalorder %s649_s8, %s832_s9  ;;  %p838_p2 = scmp.lt.s32.totalorder %s832_s9, %s832_s9 }
 0x2c8   :  { %605 = vrot.lane.b32.xlu0 %v603_v14, %s865_s26 }
 0x2c9   :  { %p839_p3 = por %p838_p2, %p837_p1 }
 0x2cb   :  { %p840_p4 = pnand %p839_p3, %p833_p0 }
 0x2cc   :  { %612 = vrot.lane.b32.xlu0 %v610_v15, %s866_s27 }
 0x2d0   :  { %625 = vrot.lane.b32.xlu0 %v623_v16, %s867_s28 }
 0x2d4   :  { %632 = vrot.lane.b32.xlu0 %v630_v17, %s868_s30 }
 0x2d8   :  { %638 = vrot.lane.b32.xlu0 %v636_v18, %s869_s7 }
 0x322   :  { %v579_v19 = vpop.permute.xlu0 %578 }
 0x323   :  { %582 = vst.msk [vmem:[#allocation6 + $0x1] sm:$0x1] %vm581_vm4, %v579_v19 }
 0x326   :  { %v599_v20 = vpop.permute.xlu0 %598 }
 0x327   :  { %602 = vst.msk [vmem:[#allocation6 + $0x3] sm:$0x1] %vm601_vm5, %v599_v20 }
 0x32a   :  { %v619_v21 = vpop.permute.xlu0 %618 }
 0x32b   :  { %622 = vst.msk [vmem:[#allocation6 + $0x5] sm:$0x1] %vm621_vm6, %v619_v21 }
 0x32e   :  { %v572_v22 = vpop.permute.xlu0 %571 }
 0x32f   :  { %575 = vst.msk [vmem:[#allocation6] sm:$0x1] %vm574_vm7, %v572_v22 }
 0x332   :  { %v586_v23 = vpop.permute.xlu0 %585 }
 0x333   :  { %589 = vst.msk [vmem:[#allocation6 + $0x1] sm:$0x1] %vm588_vm8, %v586_v23 }
 0x336   :  { %v593_v24 = vpop.permute.xlu0 %592 }
 0x337   :  { %595 = vst.msk [vmem:[#allocation6 + $0x2] sm:$0x1] %vm574_vm7, %v593_v24 }
 0x33a   :  { %v606_v25 = vpop.permute.xlu0 %605 }
 0x33b   :  { %609 = vst.msk [vmem:[#allocation6 + $0x3] sm:$0x1] %vm608_vm9, %v606_v25 }
 0x33e   :  { %v613_v26 = vpop.permute.xlu0 %612 }
 0x33f   :  { %615 = vst.msk [vmem:[#allocation6 + $0x4] sm:$0x1] %vm574_vm7, %v613_v26 }
 0x342   :  { %v626_v27 = vpop.permute.xlu0 %625 }
 0x343   :  { %629 = vst.msk [vmem:[#allocation6 + $0x5] sm:$0x1] %vm628_vm10, %v626_v27 }
 0x346   :  { %v633_v29 = vpop.permute.xlu0 %632 }
 0x347   :  { %635 = vst.msk [vmem:[#allocation6 + $0x6] sm:$0x1] %vm574_vm7, %v633_v29 }
 0x34a   :  { %v639_v30 = vpop.permute.xlu0 %638 }
 0x34b   :  { %641 = vst.msk [vmem:[#allocation6 + $0x7] sm:$0x1] %vm574_vm7, %v639_v30 }
 0x34c   :  { %843 = shalt.err (!%p840_p4)
}
 0x34d   :  { %s844_s11 = scalar_lea.hbm %s1139_s6, 128 }
 0x34e   :  { %p845_p5 = scmp.ne.s32.totalorder %s1139_s6, %s844_s11  ;;  %p848_p6 = scmp.lt.u32.totalorder %s844_s11, %s1139_s6 }
 0x350   :  { %p850_p7 = pnand %p848_p6, %p845_p5 }
 0x352   :  { %853 = shalt.err (!%p850_p7)
}
 0x353   :  { %651 = dma.vmem_to_hbm [thread:$0]  %s649_s8, 128, %s1139_s6, [#allocation7]  }
 0x354   :  { %854 = dma.done.wait [#allocation7], 128  }
 0x355   :  { %855 = vsyncadd [#allocation7], 4294967168 }
 0x356   :  { %655 = vsyncpa [#allocation7], 1 }

</bundles_post_ra>
